<compile_context>
chip_gen: v7x
topology: tpu7x:2x2x1
jax: 0.10.0
libtpu: 0.0.40
codegen_flags: <defaults>
</compile_context>

<pallas_src>
import jax
import jax.numpy as jnp
from jax.experimental import pallas as pl
from jax.experimental.pallas import tpu as pltpu


_PAD_NEG = -1e30  # bias value for padded class lanes (excluded from softmax)


def _round_up(a, m):
    return ((a + m - 1) // m) * m


def _vmem_budget_bytes():
    """Generation-aware usable VMEM per TensorCore, with ~20% headroom left
    for compiler-internal scratch / semaphores."""
    try:
        cap = int(pltpu.get_tpu_info().vmem_capacity_bytes)
    except Exception:
        cap = 64 << 20          # conservative fallback == v7x per-TC VMEM
    return int(cap * 0.8)       # ~51 MiB on v7x, ~102 MiB on v5e/v6e


# --------------------------------------------------------------------------
# Fused path: weight resident in VMEM, one grid axis over row tiles.
# --------------------------------------------------------------------------
def _fused_kernel(x_ref, w_ref, b_ref, o_ref):
    x = x_ref[...]                                            # (tm, d_model)
    # MXU projection; LHS cast to the weight dtype (no-op when they match),
    # f32 accumulation.
    p = jnp.dot(x.astype(w_ref.dtype), w_ref[...],
                preferred_element_type=jnp.float32)           # (tm, cls_p)
    p = p + b_ref[...].astype(jnp.float32)

    # log_softmax over the class (lane) axis, numerically stabilized.
    m = jnp.max(p, axis=-1, keepdims=True)
    z = p - m
    lse = jnp.log(jnp.sum(jnp.exp(z), axis=-1, keepdims=True))
    o_ref[...] = (z - lse).astype(o_ref.dtype)


# --------------------------------------------------------------------------
# Class-tiled path, pass 1: projection + online log-sum-exp.
# grid = (row tiles ["parallel"], class tiles ["arbitrary"]).
# --------------------------------------------------------------------------
def _proj_lse_kernel(x_ref, w_ref, b_ref, logits_ref, lse_ref, m_sc, l_sc):
    ki = pl.program_id(1)

    @pl.when(ki == 0)
    def _():
        m_sc[...] = jnp.full_like(m_sc, -jnp.inf)
        l_sc[...] = jnp.zeros_like(l_sc)

    p = jnp.dot(x_ref[...].astype(w_ref.dtype), w_ref[...],
                preferred_element_type=jnp.float32)           # (tm, tn)
    p = p + b_ref[...].astype(jnp.float32)
    logits_ref[...] = p.astype(logits_ref.dtype)              # raw logits out

    m_prev = m_sc[...]
    m_new = jnp.maximum(m_prev, jnp.max(p, axis=-1, keepdims=True))
    l_sc[...] = (l_sc[...] * jnp.exp(m_prev - m_new)
                 + jnp.sum(jnp.exp(p - m_new), axis=-1, keepdims=True))
    m_sc[...] = m_new

    @pl.when(ki == pl.num_programs(1) - 1)
    def _():
        lse_ref[...] = m_sc[...] + jnp.log(l_sc[...])


# --------------------------------------------------------------------------
# Class-tiled path, pass 2: lane-dense elementwise normalization.
# --------------------------------------------------------------------------
def _normalize_kernel(logits_ref, lse_ref, o_ref):
    o_ref[...] = (logits_ref[...].astype(jnp.float32)
                  - lse_ref[...]).astype(o_ref.dtype)


def generator(x, w, b, *, tm=256, tn=256, matmul_dtype=None, out_dtype=None,
              force_class_tiling=False):
    """x: [rows, d_model]; w: [d_model, cls] (= Linear.weight.T); b: [cls]."""
    rows, d_model = x.shape
    dw, cls = w.shape
    assert dw == d_model, "weight must be [d_model, cls]"
    out_dtype = x.dtype if out_dtype is None else out_dtype

    if matmul_dtype is not None:
        w = w.astype(matmul_dtype)     # halves weight DMA bytes / VMEM if bf16

    x_item = jnp.dtype(x.dtype).itemsize
    w_item = jnp.dtype(w.dtype).itemsize
    o_item = jnp.dtype(out_dtype).itemsize

    # ---- MXU-sized row tile: default 256; shrink only for small problems ----
    if rows <= tm:
        tm = rows                       # block == full dim is always legal
    else:
        tm = max(8, (tm // 8) * 8)

    budget = _vmem_budget_bytes()

    # ---- choose path: can the (padded) weight stay resident? ----
    cls_p128 = _round_up(cls, 128)
    fused_need = (d_model * cls_p128 * w_item          # resident weight
                  + cls_p128 * 4                       # bias
                  + 2 * tm * d_model * x_item          # x tiles (2 buffers)
                  + 2 * tm * cls_p128 * max(o_item, 4))  # out tiles (2 buffers)
    use_fused = (not force_class_tiling) and fused_need <= budget

    # ======================================================================
    # Fused single-pass path (small / medium cls).
    # ======================================================================
    if use_fused:
        cls_p = cls_p128
        w_p = jnp.pad(w, ((0, 0), (0, cls_p - cls))) if cls_p != cls else w
        b_p = b.astype(jnp.float32)
        if cls_p != cls:
            b_p = jnp.pad(b_p, (0, cls_p - cls), constant_values=_PAD_NEG)
        b2d = b_p.reshape(1, cls_p)

        grid = (pl.cdiv(rows, tm),)
        vmem_limit = int(min(max(fused_need * 5 // 4, 16 << 20), budget))

        cost = pl.CostEstimate(
            flops=2 * rows * d_model * cls_p + 5 * rows * cls_p,
            transcendentals=rows * cls_p + rows,
            bytes_accessed=(rows * d_model * x_item
                            + d_model * cls_p * w_item + cls_p * 4
                            + rows * cls_p * o_item),
        )

        out = pl.pallas_call(
            _fused_kernel,
            out_shape=jax.ShapeDtypeStruct((rows, cls_p), out_dtype),
            grid_spec=pltpu.PrefetchScalarGridSpec(
                num_scalar_prefetch=0,
                grid=grid,
                in_specs=[
                    pl.BlockSpec((tm, d_model), lambda i: (i, 0)),   # x tile
                    pl.BlockSpec((d_model, cls_p), lambda i: (0, 0),
                                 pipeline_mode=pl.Buffered(1)),      # weight
                    pl.BlockSpec((1, cls_p), lambda i: (0, 0),
                                 pipeline_mode=pl.Buffered(1)),      # bias
                ],
                out_specs=pl.BlockSpec((tm, cls_p), lambda i: (i, 0)),
            ),
            compiler_params=pltpu.CompilerParams(
                dimension_semantics=("parallel",),
                vmem_limit_bytes=vmem_limit),
            cost_estimate=cost,
        )(x, w_p, b2d)

        return out[:, :cls] if cls_p != cls else out

    # ======================================================================
    # Class-tiled two-pass path (LM-head sized cls).
    # ======================================================================
    tn = max(128, (min(tn, cls_p128) // 128) * 128)   # lane-dense class tile
    cls_p = _round_up(cls, tn)                        # class tiles divide evenly

    def _tiled_need(tm_):
        return (2 * tm_ * d_model * x_item     # x tiles
                + 2 * d_model * tn * w_item    # weight column tiles
                + 2 * tn * 4                   # bias tiles
                + 2 * tm_ * tn * 4             # logits out tiles (f32)
                + 2 * tm_ * 4                  # lse out (resident)
                + 2 * tm_ * 4)                 # m/l scratch

    while _tiled_need(tm) > budget and tm > 8:
        tm = max(8, (tm // 2 // 8) * 8)

    w_p = jnp.pad(w, ((0, 0), (0, cls_p - cls))) if cls_p != cls else w
    b_p = b.astype(jnp.float32)
    if cls_p != cls:
        b_p = jnp.pad(b_p, (0, cls_p - cls), constant_values=_PAD_NEG)
    b2d = b_p.reshape(1, cls_p)

    grid_rows = pl.cdiv(rows, tm)
    grid_cls = cls_p // tn

    vmem_1 = int(min(max(2 * _tiled_need(tm), 16 << 20), budget))
    norm_need = 2 * tm * tn * 4 + 2 * tm * 4 + 2 * tm * tn * o_item
    vmem_2 = int(min(max(2 * norm_need, 16 << 20), budget))

    proj_cost = pl.CostEstimate(
        flops=2 * rows * d_model * cls_p + 8 * rows * cls_p,
        transcendentals=rows * cls_p + 2 * rows * grid_cls,
        bytes_accessed=(rows * d_model * x_item
                        + grid_rows * d_model * cls_p * w_item + cls_p * 4
                        + rows * cls_p * 4 + rows * 4),
    )

    logits, lse = pl.pallas_call(
        _proj_lse_kernel,
        out_shape=(jax.ShapeDtypeStruct((rows, cls_p), jnp.float32),
                   jax.ShapeDtypeStruct((rows, 1), jnp.float32)),
        grid_spec=pltpu.PrefetchScalarGridSpec(
            num_scalar_prefetch=0,
            grid=(grid_rows, grid_cls),
            in_specs=[
                pl.BlockSpec((tm, d_model), lambda ri, ki: (ri, 0)),   # x
                pl.BlockSpec((d_model, tn), lambda ri, ki: (0, ki)),   # weight cols
                pl.BlockSpec((1, tn), lambda ri, ki: (0, ki)),         # bias cols
            ],
            out_specs=(
                pl.BlockSpec((tm, tn), lambda ri, ki: (ri, ki)),       # raw logits
                pl.BlockSpec((tm, 1), lambda ri, ki: (ri, 0)),         # lse (resident)
            ),
            scratch_shapes=[pltpu.VMEM((tm, 1), jnp.float32),          # running max
                            pltpu.VMEM((tm, 1), jnp.float32)],         # running sum
        ),
        compiler_params=pltpu.CompilerParams(
            dimension_semantics=("parallel", "arbitrary"),
            vmem_limit_bytes=vmem_1),
        cost_estimate=proj_cost,
    )(x, w_p, b2d)

    out = pl.pallas_call(
        _normalize_kernel,
        out_shape=jax.ShapeDtypeStruct((rows, cls_p), out_dtype),
        grid_spec=pltpu.PrefetchScalarGridSpec(
            num_scalar_prefetch=0,
            grid=(grid_rows, grid_cls),
            in_specs=[
                pl.BlockSpec((tm, tn), lambda ri, ki: (ri, ki)),
                pl.BlockSpec((tm, 1), lambda ri, ki: (ri, 0)),
            ],
            out_specs=pl.BlockSpec((tm, tn), lambda ri, ki: (ri, ki)),
        ),
        compiler_params=pltpu.CompilerParams(
            dimension_semantics=("parallel", "parallel"),
            vmem_limit_bytes=vmem_2),
    )(logits, lse)

    return out[:, :cls] if cls_p != cls else out


def _reference(x, w, b):
    p = x.astype(jnp.float32) @ w.astype(jnp.float32) + b.astype(jnp.float32)
    return jax.nn.log_softmax(p, axis=1)   # dim=1 == class axis for 2-D p


if __name__ == "__main__":
    # Small shapes consistent with the module: rows = batch*seq = 2*8 tokens,
    # d_model = 32, num_classes = 16.
    batch, seq, d_model, cls = 2, 8, 32, 16
    rows = batch * seq

    key = jax.random.PRNGKey(0)
    kx, kw, kb = jax.random.split(key, 3)

    x = jax.random.normal(kx, (rows, d_model), dtype=jnp.float32)
    # nn.Linear(d_model, cls) weight is [cls, d_model]; we pass its transpose.
    w = jax.random.normal(kw, (d_model, cls), dtype=jnp.float32) * 0.05
    b = jax.random.normal(kb, (cls,), dtype=jnp.float32) * 0.01

    ref = _reference(x, w, b)

    # 1) fused single-pass path (weight resident), f32 MXU.
    out = jax.block_until_ready(generator(x, w, b))
    assert out.shape == (rows, cls)
    assert jnp.allclose(out, ref, atol=2e-3, rtol=2e-3), "fused f32 mismatch"

    # 2) fused path with the bf16 MXU fast path -- looser tolerance.
    out_bf16 = jax.block_until_ready(generator(x, w, b, matmul_dtype=jnp.bfloat16))
    assert jnp.allclose(out_bf16, ref, atol=5e-2, rtol=5e-2), "fused bf16 mismatch"

    # 3) class-tiled two-pass path (the scalable LM-head path), forced here so
    #    the online log-sum-exp + normalize kernels are exercised.
    out_tiled = jax.block_until_ready(generator(x, w, b, force_class_tiling=True))
    assert out_tiled.shape == (rows, cls)
    assert jnp.allclose(out_tiled, ref, atol=2e-3, rtol=2e-3), "tiled mismatch"

    print("KERNEL_OK")
</pallas_src>

<mosaic_0001>
module attributes {stable_mosaic.version = 11 : i64} {
  func.func @_fused_kernel(%arg0: i32, %arg1: memref<16x32xf32, #tpu.memory_space<vmem>>, %arg2: memref<32x128xf32, #tpu.memory_space<vmem>>, %arg3: memref<1x128xf32, #tpu.memory_space<vmem>>, %arg4: memref<16x128xf32, #tpu.memory_space<vmem>>) attributes {dimension_semantics = [#tpu.dimension_semantics<parallel>], iteration_bounds = array<i64: 1>, scalar_prefetch = 0 : i64, scratch_operands = 0 : i64, tpu.core_type = #tpu.core_type<tc>, window_params = [{transform_indices = @transform_0, window_bounds = array<i64: 16, 32>}, {pipeline_mode = #tpu.pipeline_mode<synchronous>, transform_indices = @transform_1, window_bounds = array<i64: 32, 128>}, {pipeline_mode = #tpu.pipeline_mode<synchronous>, transform_indices = @transform_2, window_bounds = array<i64: 1, 128>}, {transform_indices = @transform_3, window_bounds = array<i64: 16, 128>}]} {
    %c0 = arith.constant 0 : index
    %c0_0 = arith.constant 0 : index
    %0 = vector.load %arg1[%c0, %c0_0] : memref<16x32xf32, #tpu.memory_space<vmem>>, vector<16x32xf32>
    %c0_1 = arith.constant 0 : index
    %c0_2 = arith.constant 0 : index
    %1 = vector.load %arg2[%c0_1, %c0_2] : memref<32x128xf32, #tpu.memory_space<vmem>>, vector<32x128xf32>
    %cst = arith.constant dense<0.000000e+00> : vector<16x128xf32>
    %2 = tpu.matmul %0, %1, %cst {dimension_numbers = #tpu.dot_dimension_numbers<[1], [0], [0], [1], [0, 0, 1, 1], [], []>} : vector<16x32xf32>, vector<32x128xf32>, vector<16x128xf32> -> vector<16x128xf32>
    %c0_3 = arith.constant 0 : index
    %c0_4 = arith.constant 0 : index
    %3 = vector.load %arg3[%c0_3, %c0_4] : memref<1x128xf32, #tpu.memory_space<vmem>>, vector<1x128xf32>
    %4 = vector.broadcast %3 : vector<1x128xf32> to vector<16x128xf32>
    %5 = arith.addf %2, %4 : vector<16x128xf32>
    %cst_5 = arith.constant dense<0xFF800000> : vector<16xf32>
    %6 = vector.multi_reduction <maximumf>, %5, %cst_5 [1] : vector<16x128xf32> to vector<16xf32>
    %7 = vector.shape_cast %6 : vector<16xf32> to vector<16x1xf32>
    %8 = vector.broadcast %7 : vector<16x1xf32> to vector<16x128xf32>
    %9 = arith.subf %5, %8 : vector<16x128xf32>
    %10 = math.exp %9 : vector<16x128xf32>
    %cst_6 = arith.constant dense<0.000000e+00> : vector<16xf32>
    %11 = vector.multi_reduction <add>, %10, %cst_6 [1] : vector<16x128xf32> to vector<16xf32>
    %12 = vector.shape_cast %11 : vector<16xf32> to vector<16x1xf32>
    %13 = math.log %12 : vector<16x1xf32>
    %14 = vector.broadcast %13 : vector<16x1xf32> to vector<16x128xf32>
    %15 = arith.subf %9, %14 : vector<16x128xf32>
    %c0_7 = arith.constant 0 : index
    %c0_8 = arith.constant 0 : index
    %16 = vector.load %arg4[%c0_7, %c0_8] : memref<16x128xf32, #tpu.memory_space<vmem>>, vector<16x128xf32>
    tpu.vector_store %arg4[%c0_7, %c0_8], %15 {strides = array<i32>} : memref<16x128xf32, #tpu.memory_space<vmem>>, vector<16x128xf32>,
    return
  }
  func.func @transform_0(%arg0: i32) -> (i32, i32) {
    %c0_i32 = arith.constant 0 : i32
    %c0_i32_0 = arith.constant 0 : i32
    return %arg0, %c0_i32 : i32, i32
  }
  func.func @transform_1(%arg0: i32) -> (i32, i32) {
    %c0_i32 = arith.constant 0 : i32
    %c0_i32_0 = arith.constant 0 : i32
    %c0_i32_1 = arith.constant 0 : i32
    return %c0_i32, %c0_i32_0 : i32, i32
  }
  func.func @transform_2(%arg0: i32) -> (i32, i32) {
    %c0_i32 = arith.constant 0 : i32
    %c0_i32_0 = arith.constant 0 : i32
    %c0_i32_1 = arith.constant 0 : i32
    return %c0_i32, %c0_i32_0 : i32, i32
  }
  func.func @transform_3(%arg0: i32) -> (i32, i32) {
    %c0_i32 = arith.constant 0 : i32
    %c0_i32_0 = arith.constant 0 : i32
    return %arg0, %c0_i32 : i32, i32
  }
}

</mosaic_0001>

<bundles_post_ra>
// kernel: tpu_custom_call.1
= control target key start
LH: loop header
LB: loop body
LE: loop exit
PB: predicated region body
PF: predicated region fallthrough
CT: control target
= control target key end

     0   :  { %8 = vsyncpa [#allocation3], 0  ;;  %s364_s0 = inlined_call_operand.hbm [shape: f32[16,32], index: 0, kind: input, shape index: {}]   ;;  %s365_s1 = inlined_call_operand.hbm [shape: f32[32,128], index: 1, kind: input, shape index: {}]   ;;  %s366_s2 = inlined_call_operand.vmem [shape: f32[1,128], index: 2, kind: input, shape index: {}]   ;;  %s367_s3 = inlined_call_operand.hbm [shape: f32[16,128], index: 3, kind: output, shape index: {}]  }
   0x1   :  { %9 = vsyncpa [#allocation6], 0 }
   0x2   :  { %10 = vsyncpa [#allocation4], 0  ;;  %s291_s12 = smov [#allocation2]   ;;  %s219_s16 = scalar_lea.hbm %s364_s0, 256 }
   0x3   :  { %s16_s13 = sshll.u32 %s291_s12, 4  ;;  %p220_p0 = scmp.ne.s32.totalorder %s364_s0, %s219_s16  ;;  %s17_s13 = int_to_ptr.vmem [resolvable:$true] %s16_s13 }
   0x4   :  { %p223_p1 = scmp.lt.u32.totalorder %s219_s16, %s364_s0 }
   0x6   :  { %p225_p2 = pnand %p223_p1, %p220_p0 }
   0x8   :  { %228 = shalt.err (!%p225_p2)
}
   0x9   :  { %s229_s21 = scalar_lea.vmem %s17_s13, 256  ;;  %p234_p4 = scmp.lt.s32.totalorder %s17_s13, %s17_s13 }
   0xa   :  { %p230_p3 = scmp.ne.s32.totalorder %s17_s13, %s229_s21  ;;  %p235_p5 = scmp.lt.s32.totalorder %s229_s21, %s229_s21 }
   0xc   :  { %p236_p6 = por %p235_p5, %p234_p4 }
   0xe   :  { %p237_p7 = pnand %p236_p6, %p230_p3 }
  0x10   :  { %240 = shalt.err (!%p237_p7)
}
  0x11   :  { %s292_s22 = smov 128   ;;  %s293_s23 = smov 8  }
  0x12   :  { %22 = dma.hbm_to_vmem [thread:$0]  %s364_s0, 256, %s17_s13, [#allocation3], %s292_s22, %s292_s22, %s293_s23  }
  0x13   :  { %s294_s26 = smov [#allocation5]   ;;  %s241_s30 = scalar_lea.hbm %s365_s1, 512 }
  0x14   :  { %s28_s27 = sshll.u32 %s294_s26, 4  ;;  %p242_p8 = scmp.ne.s32.totalorder %s365_s1, %s241_s30  ;;  %s29_s27 = int_to_ptr.vmem [resolvable:$true] %s28_s27 }
  0x15   :  { %p245_p9 = scmp.lt.u32.totalorder %s241_s30, %s365_s1 }
  0x17   :  { %p247_p10 = pnand %p245_p9, %p242_p8 }
  0x19   :  { %250 = shalt.err (!%p247_p10)
}
  0x1a   :  { %s251_s8 = scalar_lea.vmem %s29_s27, 512  ;;  %p256_p12 = scmp.lt.s32.totalorder %s29_s27, %s29_s27 }
  0x1b   :  { %p252_p11 = scmp.ne.s32.totalorder %s29_s27, %s251_s8  ;;  %p257_p13 = scmp.lt.s32.totalorder %s251_s8, %s251_s8 }
  0x1d   :  { %p258_p0 = por %p257_p13, %p256_p12 }
  0x1f   :  { %p259_p1 = pnand %p258_p0, %p252_p11 }
  0x21   :  { %262 = shalt.err (!%p259_p1)
}
  0x22   :  { %34 = dma.hbm_to_vmem [thread:$0]  %s365_s1, 512, %s29_s27, [#allocation6], %s292_s22, %s292_s22, %s293_s23  }
  0x23   :  { %285 = dma.done.wait [#allocation3], 256  }
  0x24   :  { %286 = vsyncadd [#allocation3], 4294967040 }
  0x25   :  { %287 = dma.done.wait [#allocation6], 512  }
  0x26   :  { %288 = vsyncadd [#allocation6], 4294966784  ;;  %vm56_vm0 = vcmask 261120   ;;  %v45_v0 = vld [vmem:[#allocation5] sm:$0xff]  ;;  %v46_v1 = vld [vmem:[#allocation5 + $0x8] sm:$0xff] }
  0x27   :  { %v47_v2 = vld [vmem:[#allocation5 + $0x10] sm:$0xff]  ;;  %v198_v3 = vpack.c.bf16 %v46_v1, %v45_v0  ;;  %v48_v4 = vld [vmem:[#allocation5 + $0x18] sm:$0xff] }
  0x28   :  { %v43_v5 = vld [vmem:[#allocation2] sm:$0xff]  ;;  %v202_v6 = vpack.c.bf16 %v48_v4, %v47_v2  ;;  %v44_v7 = vld [vmem:[#allocation2 + $0x8] sm:$0xff] }
  0x29   :  { %195 = vmatprep.mubr.msk.f32.mxu0 %vm56_vm0, %v43_v5  ;;  %199 = vmatprep.subr.bf16.mxu0 %v198_v3  ;;  %v178_v8 = vld [vmem:[%s366_s2] ss:$0 sm:$0xff]  ;;  %s295_s2 = smov [#allocation7]  }
  0x2a   :  { %201 = vmatpush3.bf16.msra.mxu0 %v198_v3  ;;  %s165_s11 = sshll.u32 %s295_s2, 4  ;;  %s166_s11 = int_to_ptr.vmem [resolvable:$true] %s165_s11 }
  0x2b   :  { %203 = vmatprep.subr.bf16.mxu0 %v202_v6  ;;  %s263_s12 = scalar_lea.vmem %s166_s11, 256  ;;  %p268_p3 = scmp.lt.s32.totalorder %s166_s11, %s166_s11 }
  0x2c   :  { %p264_p2 = scmp.ne.s32.totalorder %s166_s11, %s263_s12  ;;  %p269_p4 = scmp.lt.s32.totalorder %s263_s12, %s263_s12 }
  0x2e   :  { %205 = vmatpush3.bf16.msra.mxu0 %v202_v6  ;;  %p270_p5 = por %p269_p4, %p268_p3 }
  0x30   :  { %p271_p6 = pnand %p270_p5, %p264_p2 }
  0x31   :  { %196 = vmatmul.mubr.msk.f32.vlgmr.msra.gmra.mrb[0].mxu0 %vm56_vm0, %v44_v7 }
 0x104   :  { %v197_v9 = vpop.f32.mrb[0].mxu0 }
 0x105   :  { %v129_v10 = vpop.f32.mrb[1].mxu0  ;;  %v135_v12 = vadd.f32 %v197_v9, %v178_v8 }
 0x106   :  { %v130_v11 = vadd.f32 %v178_v8, %v129_v10 }
 0x108   :  { %138 = vmax.xlane.f32.xlu0 %v130_v11 }
 0x10c   :  { %140 = vmax.xlane.f32.xlu0 %v135_v12 }
 0x195   :  { %v139_v13 = vpop.xlane.xlu0 %138 }
 0x196   :  { %v142_v14 = vsub.f32 %v130_v11, %v139_v13 }
 0x198   :  { %v144_v15 = vmul.f32 1.442695, %v142_v14 }
 0x199   :  { %v141_v16 = vpop.xlane.xlu0 %140 }
 0x19a   :  { %v143_v17 = vsub.f32 %v135_v12, %v141_v16  ;;  %211 = vpow2.f32 %v144_v15 }
 0x19c   :  { %v146_v18 = vmul.f32 1.442695, %v143_v17 }
 0x19e   :  { %213 = vpow2.f32 %v146_v18 }
 0x1a4   :  { %v212_v19 = vpop.eup %211 }
 0x1a5   :  { %148 = vadd.xlane.f32.xlu1 %v212_v19 }
 0x1a8   :  { %v214_v20 = vpop.eup %213 }
 0x1a9   :  { %150 = vadd.xlane.f32.xlu1 %v214_v20 }
 0x232   :  { %v149_v21 = vpop.xlane.xlu1 %148 }
 0x233   :  { %215 = vlog2.f32 %v149_v21 }
 0x236   :  { %v151_v22 = vpop.xlane.xlu1 %150 }
 0x237   :  { %217 = vlog2.f32 %v151_v22 }
 0x23d   :  { %v216_v23 = vpop.eup %215 }
 0x23e   :  { %v153_v24 = vmul.f32 0.6931472, %v216_v23 }
 0x240   :  { %v156_v25 = vsub.f32 %v142_v14, %v153_v24 }
 0x241   :  { %v218_v26 = vpop.eup %217 }
 0x242   :  { %158 = vst [vmem:[#allocation7] sm:$0xff] %v156_v25  ;;  %v155_v27 = vmul.f32 0.6931472, %v218_v26 }
 0x244   :  { %v157_v28 = vsub.f32 %v143_v17, %v155_v27 }
 0x246   :  { %159 = vst [vmem:[#allocation7 + $0x8] sm:$0xff] %v157_v28 }
 0x247   :  { %274 = shalt.err (!%p271_p6)
}
 0x248   :  { %s275_s15 = scalar_lea.hbm %s367_s3, 256 }
 0x249   :  { %p276_p7 = scmp.ne.s32.totalorder %s367_s3, %s275_s15  ;;  %p279_p8 = scmp.lt.u32.totalorder %s275_s15, %s367_s3 }
 0x24b   :  { %p281_p9 = pnand %p279_p8, %p276_p7 }
 0x24d   :  { %284 = shalt.err (!%p281_p9)
}
 0x24e   :  { %171 = dma.vmem_to_hbm [thread:$0]  %s166_s11, 256, %s367_s3, [#allocation4], %s292_s22, %s292_s22, %s293_s23  }
 0x24f   :  { %289 = dma.done.wait [#allocation4], 256  }
 0x250   :  { %290 = vsyncadd [#allocation4], 4294967040 }
 0x251   :  { %175 = vsyncpa [#allocation3], 1 }
 0x252   :  { %176 = vsyncpa [#allocation6], 1 }
 0x253   :  { %177 = vsyncpa [#allocation4], 1 }

</bundles_post_ra>
